<compile_context>
chip_gen: v7x
topology: tpu7x:2x2x1
jax: 0.10.0
libtpu: 0.0.40
codegen_flags: <defaults>
</compile_context>

<pallas_src>
import functools

import jax
import jax.numpy as jnp
from jax.experimental import pallas as pl
from jax.experimental.pallas import tpu as pltpu

_LANES = 128
_TH_MAX = 2048  # max row-tile (rows of 128 lanes) -> 1 MiB f32 per buffer


def _stats_kernel(pred_ref, tgt_ref, out_ref,
                  tp_acc, sp_acc, st_acc, l1_acc, lse_acc, *, lse_alpha):
    """Refs: pred/tgt (1, TH, 128); out (1, 8, 128); five (1, 128) scratch."""
    r = pl.program_id(1)
    nr = pl.num_programs(1)

    @pl.when(r == 0)
    def _():
        tp_acc[...] = jnp.zeros_like(tp_acc)
        sp_acc[...] = jnp.zeros_like(sp_acc)
        st_acc[...] = jnp.zeros_like(st_acc)
        l1_acc[...] = jnp.zeros_like(l1_acc)
        lse_acc[...] = jnp.zeros_like(lse_acc)

    p = pred_ref[0].astype(jnp.float32)   # (TH, 128)
    t = tgt_ref[0].astype(jnp.float32)

    # Per-lane partial sums (cross-vreg adds on VALU, sublane reduce on XLU).
    tp_acc[...] += jnp.sum(p * t, axis=0, keepdims=True)
    sp_acc[...] += jnp.sum(p, axis=0, keepdims=True)
    st_acc[...] += jnp.sum(t, axis=0, keepdims=True)
    l1_acc[...] += jnp.sum(jnp.abs(p - t), axis=0, keepdims=True)
    # exp goes to the EUP (its own slot); keep it in f32 on all generations.
    lse_acc[...] += jnp.sum(jnp.exp(lse_alpha * p), axis=0, keepdims=True)

    @pl.when(r == nr - 1)
    def _():
        tp = jnp.sum(tp_acc[...])
        sp = jnp.sum(sp_acc[...])
        st = jnp.sum(st_acc[...])
        l1 = jnp.sum(l1_acc[...])
        lse = jnp.sum(lse_acc[...])
        lane = jax.lax.broadcasted_iota(jnp.int32, (8, _LANES), 1)
        row = jnp.zeros((8, _LANES), jnp.float32)
        row = jnp.where(lane == 0, tp, row)
        row = jnp.where(lane == 1, sp, row)
        row = jnp.where(lane == 2, st, row)
        row = jnp.where(lane == 3, l1, row)
        row = jnp.where(lane == 4, lse, row)
        out_ref[0] = row


def ir_drop_loss(pred, target,
                 weight_tversky=1.0, weight_mae=1.0, weight_max=0.1,
                 tversky_alpha=0.3, tversky_beta=0.7, smooth=1e-6,
                 lse_alpha=50.0):
    """pred, target: (B, 1, H, W) arrays (any float dtype). Returns scalar loss."""
    B, C, H, W = pred.shape
    assert C == 1, "IRDropLoss expects single-channel maps (B, 1, H, W)"

    flat = C * H * W
    nr = pl.cdiv(flat, _LANES)          # rows of 128 lanes per image
    if nr <= _TH_MAX:
        th = nr                          # single full-extent block per image
        num_tiles = 1
    else:
        th = _TH_MAX                     # multiple of 8
        num_tiles = pl.cdiv(nr, th)
    nr_padded = num_tiles * th
    flat_padded = nr_padded * _LANES
    pad = flat_padded - flat

    # Keep native dtype; only reshape (and zero-pad the tail if needed).
    p = pred.reshape(B, flat)
    t = target.reshape(B, flat)
    if pad:
        p = jnp.pad(p, ((0, 0), (0, pad)))
        t = jnp.pad(t, ((0, 0), (0, pad)))
    p = p.reshape(B, nr_padded, _LANES)
    t = t.reshape(B, nr_padded, _LANES)

    stats = pl.pallas_call(
        functools.partial(_stats_kernel, lse_alpha=float(lse_alpha)),
        out_shape=jax.ShapeDtypeStruct((B, 8, _LANES), jnp.float32),
        grid_spec=pltpu.PrefetchScalarGridSpec(
            num_scalar_prefetch=0,
            grid=(B, num_tiles),
            in_specs=[
                pl.BlockSpec((1, th, _LANES), lambda b, r: (b, r, 0)),
                pl.BlockSpec((1, th, _LANES), lambda b, r: (b, r, 0)),
            ],
            out_specs=pl.BlockSpec((1, 8, _LANES), lambda b, r: (b, 0, 0)),
            scratch_shapes=[pltpu.VMEM((1, _LANES), jnp.float32)] * 5,
        ),
        compiler_params=pltpu.CompilerParams(
            dimension_semantics=("parallel", "arbitrary"),
            vmem_limit_bytes=32 * 1024 * 1024,
        ),
    )(p, t)

    TP = stats[:, 0, 0]
    sum_p = stats[:, 0, 1]
    sum_t = stats[:, 0, 2]
    l1_sum = stats[:, 0, 3]
    exp_sum = stats[:, 0, 4] - float(pad)   # padded zeros contribute exp(0)=1 each

    FP = sum_p - TP
    FN = sum_t - TP

    # Tversky loss
    tversky = (TP + smooth) / (TP + tversky_alpha * FP + tversky_beta * FN + smooth)
    tversky_loss = 1.0 - jnp.mean(tversky)

    # MAE (F.l1_loss default reduction='mean' over all real elements)
    mae_loss = jnp.sum(l1_sum) / (B * C * H * W)

    # Smooth max penalty via log-sum-exp (no max-shift, matching the reference)
    soft_max = jnp.mean(jnp.log(exp_sum) / lse_alpha)
    max_loss = (soft_max - 1.0) ** 2

    return (weight_tversky * tversky_loss
            + weight_mae * mae_loss
            + weight_max * max_loss)


def _reference_loss(pred, target,
                    weight_tversky=1.0, weight_mae=1.0, weight_max=0.1,
                    tversky_alpha=0.3, tversky_beta=0.7, smooth=1e-6,
                    lse_alpha=50.0):
    """Pure-JAX reference mirroring the PyTorch forward()."""
    B = pred.shape[0]
    pf = pred.reshape(B, -1).astype(jnp.float32)
    tf = target.reshape(B, -1).astype(jnp.float32)
    TP = jnp.sum(pf * tf, axis=1)
    FP = jnp.sum((1.0 - tf) * pf, axis=1)
    FN = jnp.sum(tf * (1.0 - pf), axis=1)
    tversky = (TP + smooth) / (TP + tversky_alpha * FP + tversky_beta * FN + smooth)
    tversky_loss = 1.0 - jnp.mean(tversky)
    mae = jnp.mean(jnp.abs(pf - tf))
    soft_max = jnp.mean(jnp.log(jnp.sum(jnp.exp(lse_alpha * pf), axis=1)) / lse_alpha)
    max_loss = (soft_max - 1.0) ** 2
    return weight_tversky * tversky_loss + weight_mae * mae + weight_max * max_loss


if __name__ == "__main__":
    key = jax.random.PRNGKey(0)
    k1, k2 = jax.random.split(key)
    B, C, H, W = 2, 1, 16, 16
    # IR-drop maps normalized to [0, 1]
    pred = jax.random.uniform(k1, (B, C, H, W), dtype=jnp.float32)
    target = jax.random.uniform(k2, (B, C, H, W), dtype=jnp.float32)

    loss = jax.block_until_ready(ir_drop_loss(pred, target))
    ref = jax.block_until_ready(_reference_loss(pred, target))

    assert jnp.isfinite(loss), "loss is not finite"
    assert jnp.allclose(loss, ref, rtol=1e-5, atol=1e-5), (loss, ref)
    print("KERNEL_OK")
</pallas_src>

<mosaic_0001>
module attributes {stable_mosaic.version = 11 : i64} {
  func.func @_stats_kernel(%arg0: i32, %arg1: i32, %arg2: memref<1x2x128xf32, #tpu.memory_space<vmem>>, %arg3: memref<1x2x128xf32, #tpu.memory_space<vmem>>, %arg4: memref<1x8x128xf32, #tpu.memory_space<vmem>>, %arg5: memref<1x128xf32, #tpu.memory_space<vmem>>, %arg6: memref<1x128xf32, #tpu.memory_space<vmem>>, %arg7: memref<1x128xf32, #tpu.memory_space<vmem>>, %arg8: memref<1x128xf32, #tpu.memory_space<vmem>>, %arg9: memref<1x128xf32, #tpu.memory_space<vmem>>) attributes {dimension_semantics = [#tpu.dimension_semantics<parallel>, #tpu.dimension_semantics<arbitrary>], iteration_bounds = array<i64: 2, 1>, scalar_prefetch = 0 : i64, scratch_operands = 5 : i64, tpu.core_type = #tpu.core_type<tc>, window_params = [{transform_indices = @transform_0, window_bounds = array<i64: 1, 2, 128>}, {transform_indices = @transform_1, window_bounds = array<i64: 1, 2, 128>}, {transform_indices = @transform_2, window_bounds = array<i64: 1, 8, 128>}]} {
    %c0_i32 = arith.constant 0 : i32
    %0 = arith.cmpi eq, %arg1, %c0_i32 : i32
    %1 = arith.extui %0 : i1 to i32
    %c0_i32_0 = arith.constant 0 : i32
    %2 = arith.cmpi ne, %1, %c0_i32_0 : i32
    scf.if %2 {
      %cst_33 = arith.constant 0.000000e+00 : f32
      %41 = vector.broadcast %cst_33 : f32 to vector<1x128xf32>
      %c0_34 = arith.constant 0 : index
      %c0_35 = arith.constant 0 : index
      %42 = vector.load %arg5[%c0_34, %c0_35] : memref<1x128xf32, #tpu.memory_space<vmem>>, vector<1x128xf32>
      tpu.vector_store %arg5[%c0_34, %c0_35], %41 {strides = array<i32>} : memref<1x128xf32, #tpu.memory_space<vmem>>, vector<1x128xf32>,
      %cst_36 = arith.constant 0.000000e+00 : f32
      %43 = vector.broadcast %cst_36 : f32 to vector<1x128xf32>
      %c0_37 = arith.constant 0 : index
      %c0_38 = arith.constant 0 : index
      %44 = vector.load %arg6[%c0_37, %c0_38] : memref<1x128xf32, #tpu.memory_space<vmem>>, vector<1x128xf32>
      tpu.vector_store %arg6[%c0_37, %c0_38], %43 {strides = array<i32>} : memref<1x128xf32, #tpu.memory_space<vmem>>, vector<1x128xf32>,
      %cst_39 = arith.constant 0.000000e+00 : f32
      %45 = vector.broadcast %cst_39 : f32 to vector<1x128xf32>
      %c0_40 = arith.constant 0 : index
      %c0_41 = arith.constant 0 : index
      %46 = vector.load %arg7[%c0_40, %c0_41] : memref<1x128xf32, #tpu.memory_space<vmem>>, vector<1x128xf32>
      tpu.vector_store %arg7[%c0_40, %c0_41], %45 {strides = array<i32>} : memref<1x128xf32, #tpu.memory_space<vmem>>, vector<1x128xf32>,
      %cst_42 = arith.constant 0.000000e+00 : f32
      %47 = vector.broadcast %cst_42 : f32 to vector<1x128xf32>
      %c0_43 = arith.constant 0 : index
      %c0_44 = arith.constant 0 : index
      %48 = vector.load %arg8[%c0_43, %c0_44] : memref<1x128xf32, #tpu.memory_space<vmem>>, vector<1x128xf32>
      tpu.vector_store %arg8[%c0_43, %c0_44], %47 {strides = array<i32>} : memref<1x128xf32, #tpu.memory_space<vmem>>, vector<1x128xf32>,
      %cst_45 = arith.constant 0.000000e+00 : f32
      %49 = vector.broadcast %cst_45 : f32 to vector<1x128xf32>
      %c0_46 = arith.constant 0 : index
      %c0_47 = arith.constant 0 : index
      %50 = vector.load %arg9[%c0_46, %c0_47] : memref<1x128xf32, #tpu.memory_space<vmem>>, vector<1x128xf32>
      tpu.vector_store %arg9[%c0_46, %c0_47], %49 {strides = array<i32>} : memref<1x128xf32, #tpu.memory_space<vmem>>, vector<1x128xf32>,
    } else {
    }
    %c0 = arith.constant 0 : index
    %c0_1 = arith.constant 0 : index
    %c0_2 = arith.constant 0 : index
    %3 = vector.load %arg2[%c0, %c0_1, %c0_2] : memref<1x2x128xf32, #tpu.memory_space<vmem>>, vector<1x2x128xf32>
    %4 = vector.shape_cast %3 : vector<1x2x128xf32> to vector<2x128xf32>
    %c0_3 = arith.constant 0 : index
    %c0_4 = arith.constant 0 : index
    %c0_5 = arith.constant 0 : index
    %5 = vector.load %arg3[%c0_3, %c0_4, %c0_5] : memref<1x2x128xf32, #tpu.memory_space<vmem>>, vector<1x2x128xf32>
    %6 = vector.shape_cast %5 : vector<1x2x128xf32> to vector<2x128xf32>
    %c0_6 = arith.constant 0 : index
    %c0_7 = arith.constant 0 : index
    %7 = vector.load %arg5[%c0_6, %c0_7] : memref<1x128xf32, #tpu.memory_space<vmem>>, vector<1x128xf32>
    %8 = arith.mulf %4, %6 : vector<2x128xf32>
    %cst = arith.constant dense<0.000000e+00> : vector<128xf32>
    %9 = vector.multi_reduction <add>, %8, %cst [0] : vector<2x128xf32> to vector<128xf32>
    %10 = vector.shape_cast %9 : vector<128xf32> to vector<1x128xf32>
    %11 = arith.addf %7, %10 : vector<1x128xf32>
    %c0_8 = arith.constant 0 : index
    %c0_9 = arith.constant 0 : index
    %12 = vector.load %arg5[%c0_8, %c0_9] : memref<1x128xf32, #tpu.memory_space<vmem>>, vector<1x128xf32>
    tpu.vector_store %arg5[%c0_8, %c0_9], %11 {strides = array<i32>} : memref<1x128xf32, #tpu.memory_space<vmem>>, vector<1x128xf32>,
    %c0_10 = arith.constant 0 : index
    %c0_11 = arith.constant 0 : index
    %13 = vector.load %arg6[%c0_10, %c0_11] : memref<1x128xf32, #tpu.memory_space<vmem>>, vector<1x128xf32>
    %cst_12 = arith.constant dense<0.000000e+00> : vector<128xf32>
    %14 = vector.multi_reduction <add>, %4, %cst_12 [0] : vector<2x128xf32> to vector<128xf32>
    %15 = vector.shape_cast %14 : vector<128xf32> to vector<1x128xf32>
    %16 = arith.addf %13, %15 : vector<1x128xf32>
    %c0_13 = arith.constant 0 : index
    %c0_14 = arith.constant 0 : index
    %17 = vector.load %arg6[%c0_13, %c0_14] : memref<1x128xf32, #tpu.memory_space<vmem>>, vector<1x128xf32>
    tpu.vector_store %arg6[%c0_13, %c0_14], %16 {strides = array<i32>} : memref<1x128xf32, #tpu.memory_space<vmem>>, vector<1x128xf32>,
    %c0_15 = arith.constant 0 : index
    %c0_16 = arith.constant 0 : index
    %18 = vector.load %arg7[%c0_15, %c0_16] : memref<1x128xf32, #tpu.memory_space<vmem>>, vector<1x128xf32>
    %cst_17 = arith.constant dense<0.000000e+00> : vector<128xf32>
    %19 = vector.multi_reduction <add>, %6, %cst_17 [0] : vector<2x128xf32> to vector<128xf32>
    %20 = vector.shape_cast %19 : vector<128xf32> to vector<1x128xf32>
    %21 = arith.addf %18, %20 : vector<1x128xf32>
    %c0_18 = arith.constant 0 : index
    %c0_19 = arith.constant 0 : index
    %22 = vector.load %arg7[%c0_18, %c0_19] : memref<1x128xf32, #tpu.memory_space<vmem>>, vector<1x128xf32>
    tpu.vector_store %arg7[%c0_18, %c0_19], %21 {strides = array<i32>} : memref<1x128xf32, #tpu.memory_space<vmem>>, vector<1x128xf32>,
    %c0_20 = arith.constant 0 : index
    %c0_21 = arith.constant 0 : index
    %23 = vector.load %arg8[%c0_20, %c0_21] : memref<1x128xf32, #tpu.memory_space<vmem>>, vector<1x128xf32>
    %24 = arith.subf %4, %6 : vector<2x128xf32>
    %25 = math.absf %24 : vector<2x128xf32>
    %cst_22 = arith.constant dense<0.000000e+00> : vector<128xf32>
    %26 = vector.multi_reduction <add>, %25, %cst_22 [0] : vector<2x128xf32> to vector<128xf32>
    %27 = vector.shape_cast %26 : vector<128xf32> to vector<1x128xf32>
    %28 = arith.addf %23, %27 : vector<1x128xf32>
    %c0_23 = arith.constant 0 : index
    %c0_24 = arith.constant 0 : index
    %29 = vector.load %arg8[%c0_23, %c0_24] : memref<1x128xf32, #tpu.memory_space<vmem>>, vector<1x128xf32>
    tpu.vector_store %arg8[%c0_23, %c0_24], %28 {strides = array<i32>} : memref<1x128xf32, #tpu.memory_space<vmem>>, vector<1x128xf32>,
    %c0_25 = arith.constant 0 : index
    %c0_26 = arith.constant 0 : index
    %30 = vector.load %arg9[%c0_25, %c0_26] : memref<1x128xf32, #tpu.memory_space<vmem>>, vector<1x128xf32>
    %cst_27 = arith.constant 5.000000e+01 : f32
    %31 = vector.broadcast %cst_27 : f32 to vector<2x128xf32>
    %32 = arith.mulf %31, %4 : vector<2x128xf32>
    %33 = math.exp %32 : vector<2x128xf32>
    %cst_28 = arith.constant dense<0.000000e+00> : vector<128xf32>
    %34 = vector.multi_reduction <add>, %33, %cst_28 [0] : vector<2x128xf32> to vector<128xf32>
    %35 = vector.shape_cast %34 : vector<128xf32> to vector<1x128xf32>
    %36 = arith.addf %30, %35 : vector<1x128xf32>
    %c0_29 = arith.constant 0 : index
    %c0_30 = arith.constant 0 : index
    %37 = vector.load %arg9[%c0_29, %c0_30] : memref<1x128xf32, #tpu.memory_space<vmem>>, vector<1x128xf32>
    tpu.vector_store %arg9[%c0_29, %c0_30], %36 {strides = array<i32>} : memref<1x128xf32, #tpu.memory_space<vmem>>, vector<1x128xf32>,
    %c0_i32_31 = arith.constant 0 : i32
    %38 = arith.cmpi eq, %arg1, %c0_i32_31 : i32
    %39 = arith.extui %38 : i1 to i32
    %c0_i32_32 = arith.constant 0 : i32
    %40 = arith.cmpi ne, %39, %c0_i32_32 : i32
    scf.if %40 {
      %c0_33 = arith.constant 0 : index
      %c0_34 = arith.constant 0 : index
      %41 = vector.load %arg5[%c0_33, %c0_34] : memref<1x128xf32, #tpu.memory_space<vmem>>, vector<1x128xf32>
      %42 = vector.shape_cast %41 : vector<1x128xf32> to vector<1x1x128xf32>
      %cst_35 = arith.constant dense<0.000000e+00> : vector<1xf32>
      %43 = vector.multi_reduction <add>, %42, %cst_35 [1, 2] : vector<1x1x128xf32> to vector<1xf32>
      %44 = vector.shape_cast %43 : vector<1xf32> to vector<1x1x1xf32>
      %45 = vector.extract %44[0, 0, 0] : f32 from vector<1x1x1xf32>
      %c0_36 = arith.constant 0 : index
      %c0_37 = arith.constant 0 : index
      %46 = vector.load %arg6[%c0_36, %c0_37] : memref<1x128xf32, #tpu.memory_space<vmem>>, vector<1x128xf32>
      %47 = vector.shape_cast %46 : vector<1x128xf32> to vector<1x1x128xf32>
      %cst_38 = arith.constant dense<0.000000e+00> : vector<1xf32>
      %48 = vector.multi_reduction <add>, %47, %cst_38 [1, 2] : vector<1x1x128xf32> to vector<1xf32>
      %49 = vector.shape_cast %48 : vector<1xf32> to vector<1x1x1xf32>
      %50 = vector.extract %49[0, 0, 0] : f32 from vector<1x1x1xf32>
      %c0_39 = arith.constant 0 : index
      %c0_40 = arith.constant 0 : index
      %51 = vector.load %arg7[%c0_39, %c0_40] : memref<1x128xf32, #tpu.memory_space<vmem>>, vector<1x128xf32>
      %52 = vector.shape_cast %51 : vector<1x128xf32> to vector<1x1x128xf32>
      %cst_41 = arith.constant dense<0.000000e+00> : vector<1xf32>
      %53 = vector.multi_reduction <add>, %52, %cst_41 [1, 2] : vector<1x1x128xf32> to vector<1xf32>
      %54 = vector.shape_cast %53 : vector<1xf32> to vector<1x1x1xf32>
      %55 = vector.extract %54[0, 0, 0] : f32 from vector<1x1x1xf32>
      %c0_42 = arith.constant 0 : index
      %c0_43 = arith.constant 0 : index
      %56 = vector.load %arg8[%c0_42, %c0_43] : memref<1x128xf32, #tpu.memory_space<vmem>>, vector<1x128xf32>
      %57 = vector.shape_cast %56 : vector<1x128xf32> to vector<1x1x128xf32>
      %cst_44 = arith.constant dense<0.000000e+00> : vector<1xf32>
      %58 = vector.multi_reduction <add>, %57, %cst_44 [1, 2] : vector<1x1x128xf32> to vector<1xf32>
      %59 = vector.shape_cast %58 : vector<1xf32> to vector<1x1x1xf32>
      %60 = vector.extract %59[0, 0, 0] : f32 from vector<1x1x1xf32>
      %c0_45 = arith.constant 0 : index
      %c0_46 = arith.constant 0 : index
      %61 = vector.load %arg9[%c0_45, %c0_46] : memref<1x128xf32, #tpu.memory_space<vmem>>, vector<1x128xf32>
      %62 = vector.shape_cast %61 : vector<1x128xf32> to vector<1x1x128xf32>
      %cst_47 = arith.constant dense<0.000000e+00> : vector<1xf32>
      %63 = vector.multi_reduction <add>, %62, %cst_47 [1, 2] : vector<1x1x128xf32> to vector<1xf32>
      %64 = vector.shape_cast %63 : vector<1xf32> to vector<1x1x1xf32>
      %65 = vector.extract %64[0, 0, 0] : f32 from vector<1x1x1xf32>
      %66 = tpu.iota {dimensions = array<i32: 1>} : vector<8x128xi32>
      %cst_48 = arith.constant 0.000000e+00 : f32
      %67 = vector.broadcast %cst_48 : f32 to vector<8x128xf32>
      %c0_i32_49 = arith.constant 0 : i32
      %68 = vector.broadcast %c0_i32_49 : i32 to vector<8x128xi32>
      %69 = arith.cmpi eq, %66, %68 : vector<8x128xi32>
      %70 = vector.broadcast %45 : f32 to vector<8x128xf32>
      %71 = arith.select %69, %70, %67 : vector<8x128xi1>, vector<8x128xf32>
      %c1_i32 = arith.constant 1 : i32
      %72 = vector.broadcast %c1_i32 : i32 to vector<8x128xi32>
      %73 = arith.cmpi eq, %66, %72 : vector<8x128xi32>
      %74 = vector.broadcast %50 : f32 to vector<8x128xf32>
      %75 = arith.select %73, %74, %71 : vector<8x128xi1>, vector<8x128xf32>
      %c2_i32 = arith.constant 2 : i32
      %76 = vector.broadcast %c2_i32 : i32 to vector<8x128xi32>
      %77 = arith.cmpi eq, %66, %76 : vector<8x128xi32>
      %78 = vector.broadcast %55 : f32 to vector<8x128xf32>
      %79 = arith.select %77, %78, %75 : vector<8x128xi1>, vector<8x128xf32>
      %c3_i32 = arith.constant 3 : i32
      %80 = vector.broadcast %c3_i32 : i32 to vector<8x128xi32>
      %81 = arith.cmpi eq, %66, %80 : vector<8x128xi32>
      %82 = vector.broadcast %60 : f32 to vector<8x128xf32>
      %83 = arith.select %81, %82, %79 : vector<8x128xi1>, vector<8x128xf32>
      %c4_i32 = arith.constant 4 : i32
      %84 = vector.broadcast %c4_i32 : i32 to vector<8x128xi32>
      %85 = arith.cmpi eq, %66, %84 : vector<8x128xi32>
      %86 = vector.broadcast %65 : f32 to vector<8x128xf32>
      %87 = arith.select %85, %86, %83 : vector<8x128xi1>, vector<8x128xf32>
      %c0_50 = arith.constant 0 : index
      %c0_51 = arith.constant 0 : index
      %c0_52 = arith.constant 0 : index
      %88 = vector.load %arg4[%c0_50, %c0_51, %c0_52] : memref<1x8x128xf32, #tpu.memory_space<vmem>>, vector<1x8x128xf32>
      %89 = vector.shape_cast %88 : vector<1x8x128xf32> to vector<8x128xf32>
      %90 = vector.shape_cast %87 : vector<8x128xf32> to vector<1x8x128xf32>
      tpu.vector_store %arg4[%c0_50, %c0_51, %c0_52], %90 {strides = array<i32>} : memref<1x8x128xf32, #tpu.memory_space<vmem>>, vector<1x8x128xf32>,
    } else {
    }
    return
  }
  func.func @transform_0(%arg0: i32, %arg1: i32) -> (i32, i32, i32) {
    %c0_i32 = arith.constant 0 : i32
    %c0_i32_0 = arith.constant 0 : i32
    return %arg0, %arg1, %c0_i32 : i32, i32, i32
  }
  func.func @transform_1(%arg0: i32, %arg1: i32) -> (i32, i32, i32) {
    %c0_i32 = arith.constant 0 : i32
    %c0_i32_0 = arith.constant 0 : i32
    return %arg0, %arg1, %c0_i32 : i32, i32, i32
  }
  func.func @transform_2(%arg0: i32, %arg1: i32) -> (i32, i32, i32) {
    %c0_i32 = arith.constant 0 : i32
    %c0_i32_0 = arith.constant 0 : i32
    %c0_i32_1 = arith.constant 0 : i32
    return %arg0, %c0_i32, %c0_i32_0 : i32, i32, i32
  }
}

</mosaic_0001>

<bundles_post_ra>
// kernel: tpu_custom_call.1
= control target key start
LH: loop header
LB: loop body
LE: loop exit
PB: predicated region body
PF: predicated region fallthrough
CT: control target
= control target key end

     0   :  { %7 = vsyncpa [#allocation8], 0  ;;  %s970_s0 = inlined_call_operand.hbm [shape: f32[2,2,128], index: 0, kind: input, shape index: {}]   ;;  %s971_s1 = inlined_call_operand.hbm [shape: f32[2,2,128], index: 1, kind: input, shape index: {}]   ;;  %s972_s2 = inlined_call_operand.hbm [shape: f32[2,8,128], index: 2, kind: output, shape index: {}]  }
   0x1   :  { %9 = vsyncpa [#allocation8 + $0x1], 0 }
   0x2   :  { %10 = vsyncpa [#allocation11], 0 }
   0x3   :  { %12 = vsyncpa [#allocation11 + $0x1], 0 }
   0x4   :  { %13 = vsyncpa [#allocation9], 0 }
   0x5   :  { %15 = vsyncpa [#allocation9 + $0x1], 0  ;;  %s739_s9 = smov 0   ;;  %s741_s10 = smov 0  }
   0x6   :  { %s743_s11 = smov 0   ;;  %s745_s12 = smov 0  }
   0x7   :  { %s747_s13 = smov 0   ;;  %s749_s14 = smov 0  }
   0x8 LB: > { %s476_s15 = sadd.s32 4294967295, %s718_s14   ;;  %s477_s16 = sadd.s32 4294967294, %s718_s14   ;;  %s718_s14 = sphi %s749_s14, %s21_s14   ;;  %s714_s13 = sphi %s747_s13, %s992_s13   ;;  %s710_s12 = sphi %s745_s12, %s991_s12   ;;  %s706_s11 = sphi %s743_s11, %s990_s11   ;;  %s702_s10 = sphi %s741_s10, %s989_s10   ;;  %s698_s9 = sphi %s739_s9, %s988_s9  }
   0x9   : > { %s33_s17 = sadd.s32 1, %s714_s13  ;;  %s42_s18 = sadd.s32 1, %s706_s11 }
   0xa   : > { %p35_p0 = scmp.ge.s32.totalorder %s33_s17, 2  ;;  %p49_p1 = scmp.ne.s32.totalorder %s706_s11, %s702_s10 }
   0xb   : > { %p50_p2 = scmp.eq.s32.totalorder %s718_s14, 0  ;;  %p55_p3 = scmp.ne.s32.totalorder %s702_s10, %s698_s9 }
   0xc   : > { %s994_s17 = smov (%p35_p0, %s33_s17), 0  ;;  %p56_p5 = scmp.eq.s32.totalorder %s476_s15, 0 }
   0xd   : > { %p780_p4 = por %p50_p2, %p49_p1  ;;  %s37_s20 = ssub.s32 %s714_s13, %s994_s17 }
   0xe   : > { %p107_p6 = scmp.eq.s32.totalorder %s476_s15, 1  ;;  %p40_p7 = scmp.eq.s32.totalorder %s37_s20, 0 }
   0xf   : > { %p786_p8 = por %p56_p5, %p55_p3  ;;  %p113_p10 = scmp.eq.s32.totalorder %s477_s16, 1 }
  0x10   : > { %p790_p9 = por %p107_p6, %p49_p1  ;;  %p519_p13 = scmp.lt.s32.totalorder %s718_s14, 2 }
  0x11   : > { %s976_s21 = scalar_select %p786_p8, 1, 0 }
  0x12   : > { %s977_s22 = scalar_select %p790_p9, 1, 0 }
  0x13   : > { %s795_s23 = scalar_select %p40_p7, %s706_s11, %s42_s18  }
  0x14   : > { %p797_p11 = por %p113_p10, %p55_p3  ;;  %s804_s25 = sand.u32 1, %s706_s11  }
  0x15   : > { %s480_s26 = sshll.u32 %s804_s25, 1  ;;  %s481_s27 = sshll.u32 %s714_s13, 5 }
  0x16   : > { %s978_s24 = scalar_select %p797_p11, 1, 0 }
  0x17   : > { %s813_s30 = scalar_lea.hbm %s970_s0, %s481_s27  ;;  %s137_s3 = scalar_lea.vmem [#allocation7], %s480_s26 }
  0x18   : > { %s145_s4 = sshll.u32 %s137_s3, 4  ;;  %p821_p0 = pnand %p519_p13, %p780_p4  ;;  %s817_s4 = int_to_ptr.vmem [resolvable:$true] %s145_s4 }
  0x19   : > { %s134_s6 = scalar_lea.sflag [#allocation8], %s804_s25  ;;  %s572_s7 = scalar_lea.hbm %s813_s30, 32 }
  0x1a   : > { %p573_p3 = scmp.ne.s32.totalorder %s813_s30, %s572_s7  ;;  %p574_p5 = pneg %p821_p0 }
  0x1b   : > { %s577_s16 = scalar_lea.hbm %s970_s0, 64  ;;  %p578_p4 = scmp.lt.u32.totalorder %s813_s30, %s970_s0 }
  0x1c   : > { %p575_p6 = pnand %p574_p5, %p573_p3  ;;  %p579_p10 = scmp.lt.u32.totalorder %s577_s16, %s572_s7 }
  0x1d   : > { %p581_p12 = scmp.lt.u32.totalorder %s572_s7, %s813_s30 }
  0x1e   : > { %p576_p7 = pneg %p575_p6  ;;  %p580_p13 = por %p579_p10, %p578_p4 }
  0x20   : > { %p582_p1 = por %p581_p12, %p580_p13 }
  0x22   : > { %p583_p2 = pnand %p582_p1, %p576_p7 }
  0x24   : > { %586 = shalt.err (!%p583_p2)
}
  0x25   : > { %s587_s20 = scalar_lea.vmem %s817_s4, 32  ;;  %s720_s28 = smov [#allocation7]  }
  0x26   : > { %p588_p3 = scmp.ne.s32.totalorder %s817_s4, %s587_s20  ;;  %s592_s29 = sshll.u32 %s720_s28, 4  ;;  %s593_s29 = int_to_ptr.vmem [resolvable:$false] %s592_s29 }
  0x27   : > { %s594_s3 = scalar_lea.vmem %s593_s29, 64  ;;  %p595_p9 = scmp.lt.s32.totalorder %s817_s4, %s593_s29 }
  0x28   : > { %p590_p6 = pnand %p588_p3, %p574_p5  ;;  %p596_p4 = scmp.lt.s32.totalorder %s594_s3, %s587_s20 }
  0x2a   : > { %p591_p11 = pneg %p590_p6  ;;  %p597_p10 = por %p596_p4, %p595_p9 }
  0x2c   : > { %p598_p12 = pnand %p597_p10, %p591_p11 }
  0x2e   : > { %601 = shalt.err (!%p598_p12)
}
  0x2f   : > { %511 = dma.hbm_to_vmem [thread:$0]  (!%p821_p0), %s813_s30, 32, %s817_s4, %s134_s6  }
  0x30   : > { %p980_p1 = scmp.lt.s32.totalorder %s718_s14, 3  ;;  %p981_p2 = scmp.ge.s32.totalorder %s718_s14, 1 }
  0x31   : > { %s866_s16 = scalar_lea.hbm %s971_s1, %s481_s27  ;;  %s156_s18 = scalar_lea.vmem [#allocation10], %s480_s26 }
  0x32   : > { %p857_p7 = pnand %p981_p2, %p980_p1  ;;  %s164_s19 = sshll.u32 %s156_s18, 4  ;;  %s165_s19 = int_to_ptr.vmem [resolvable:$true] %s164_s19 }
  0x33   : > { %s153_s30 = scalar_lea.sflag [#allocation11], %s804_s25  ;;  %s602_s4 = scalar_lea.hbm %s866_s16, 32 }
  0x34   : > { %s982_s7 = scalar_select %p857_p7, 1, 0 }
  0x35   : > { %p603_p9 = scmp.ne.s32.totalorder %s866_s16, %s602_s4  ;;  %s607_s27 = scalar_lea.hbm %s971_s1, 64 }
  0x36   : > { %p608_p3 = scmp.lt.u32.totalorder %s866_s16, %s971_s1  ;;  %p609_p6 = scmp.lt.u32.totalorder %s607_s27, %s602_s4 }
  0x37   : > { %p605_p11 = pnand %p603_p9, %p574_p5  ;;  %p611_p10 = scmp.lt.u32.totalorder %s602_s4, %s866_s16 }
  0x38   : > { %p610_p4 = por %p609_p6, %p608_p3 }
  0x39   : > { %p606_p13 = pneg %p605_p11 }
  0x3a   : > { %p612_p12 = por %p611_p10, %p610_p4 }
  0x3c   : > { %p613_p1 = pnand %p612_p12, %p606_p13 }
  0x3e   : > { %616 = shalt.err (!%p613_p1)
}
  0x3f   : > { %s617_s25 = scalar_lea.vmem %s165_s19, 32  ;;  %s721_s26 = smov [#allocation10]  }
  0x40   : > { %p618_p2 = scmp.ne.s32.totalorder %s165_s19, %s617_s25  ;;  %s622_s3 = sshll.u32 %s721_s26, 4  ;;  %s623_s3 = int_to_ptr.vmem [resolvable:$false] %s622_s3 }
  0x41   : > { %s624_s8 = scalar_lea.vmem %s623_s3, 64  ;;  %p625_p8 = scmp.lt.s32.totalorder %s165_s19, %s623_s3 }
  0x42   : > { %p620_p9 = pnand %p618_p2, %p574_p5  ;;  %p626_p7 = scmp.lt.s32.totalorder %s624_s8, %s617_s25 }
  0x44   : > { %p621_p11 = pneg %p620_p9  ;;  %p627_p3 = por %p626_p7, %p625_p8 }
  0x46   : > { %p628_p6 = pnand %p627_p3, %p621_p11 }
  0x48   : > { %631 = shalt.err (!%p628_p6)
}
  0x49   : > { %514 = dma.hbm_to_vmem [thread:$0]  (!%p821_p0), %s866_s16, 32, %s165_s19, %s153_s30  }
  0x4a   : > { %p983_p13 = scmp.ne.s32.totalorder %s982_s7, 0 }
  0x4b   : > { %s893_s15 = sand.u32 (!%p983_p13), 1, %s702_s10   ;;  %p984_p5 = scmp.ne.s32.totalorder (!%p983_p13), %s976_s21, 0 }
  0x4c   : > { %173 = sbr.rel (%p983_p13) target bundleno = 347 (0x15b), region = 28  ;;  %s485_s18 = sshll.u32 (!%p983_p13), %s893_s15, 1 }
  0x4d   : > { %s176_s4 = scalar_lea.sflag (!%p983_p13), [#allocation8], %s893_s15  ;;  %s179_s6 = scalar_lea.vmem (!%p983_p13), [#allocation7], %s485_s18 }
  0x53   : > { %685 = dma.done.wait (%p984_p5), %s176_s4, 32  }
  0x54   : > { %687 = vsyncadd (%p984_p5), %s176_s4, 4294967264  ;;  %s185_s5 = scalar_lea.sflag [#allocation11], %s893_s15  ;;  %s188_s16 = scalar_lea.vmem [#allocation10], %s485_s18 }
  0x55   : > { %689 = dma.done.wait (%p984_p5), %s185_s5, 32  }
  0x56   : > { %691 = vsyncadd (%p984_p5), %s185_s5, 4294967264  ;;  %v722_v0 = vmov 0.0   ;;  %vm227_vm0 = vcmask 1041408   ;;  %v223_v1 = vld [vmem:[%s179_s6] sm:$0x3]  ;;  %vm286_vm1 = vcmask 1040384  }
  0x57   : > { %219 = vst [vmem:[#allocation3] sm:$0x1] %v722_v0  ;;  %218 = vst [vmem:[#allocation2] sm:$0x1] %v722_v0  ;;  %v224_v2 = vld [vmem:[%s188_s16] sm:$0x3] }
  0x58   : > { %220 = vst [vmem:[#allocation4] sm:$0x1] %v722_v0  ;;  %221 = vst [vmem:[#allocation5] sm:$0x1] %v722_v0  ;;  %v238_v3 = vsel %vm227_vm0, %v223_v1, 0.0  ;;  %v270_v4 = vmul.f32 50.0, %v223_v1  ;;  %v226_v5 = vmul.f32 %v224_v2, %v223_v1  ;;  %v258_v6 = vsub.f32 %v223_v1, %v224_v2 }
  0x59   : > { %222 = vst [vmem:[#allocation6] sm:$0x1] %v722_v0  ;;  %v239_v7 = vrot.slane %v238_v3, 4  ;;  %v248_v8 = vsel %vm227_vm0, %v224_v2, 0.0  ;;  %s487_s19 = sshll.u32 %s893_s15, 3  ;;  %s489_s27 = sshll.u32 %s710_s12, 7 }
  0x5a   : > { %v271_v9 = vmul.f32 1.442695, %v270_v4  ;;  %v249_v10 = vrot.slane %v248_v8, 4  ;;  %v228_v11 = vsel %vm227_vm0, %v226_v5, 0.0  ;;  %v259_v12 = vand.u32 2147483647, %v258_v6  ;;  %s921_s8 = scalar_lea.hbm %s972_s2, %s489_s27 }
  0x5b   : > { %v240_v13 = vadd.f32 %v239_v7, %v238_v3  ;;  %v229_v14 = vrot.slane %v228_v11, 4  ;;  %s213_s28 = scalar_lea.vmem [#allocation12], %s487_s19  ;;  %s360_s18 = scalar_lea.sflag [#allocation9], %s893_s15 }
  0x5c   : > { %570 = vpow2.f32 %v271_v9  ;;  %v250_v15 = vadd.f32 %v249_v10, %v248_v8  ;;  %v260_v16 = vsel %vm227_vm0, %v259_v12, 0.0  ;;  %s373_s29 = sshll.u32 %s213_s28, 4  ;;  %p985_p0 = scmp.ne.s32.totalorder %s977_s22, 0  ;;  %s923_s29 = int_to_ptr.vmem [resolvable:$true] %s373_s29 }
  0x5d   : > { %v241_v17 = vrot.slane %v240_v13, 2  ;;  %v230_v18 = vadd.f32 %v229_v14, %v228_v11  ;;  %v261_v19 = vrot.slane %v260_v16, 4  ;;  %s632_s12 = scalar_lea.vmem %s923_s29, 128  ;;  %s723_s4 = smov [#allocation12]  }
  0x5e   : > { %v251_v20 = vrot.slane %v250_v15, 2  ;;  %v237_v28 = vld [vmem:[#allocation3] sm:$0x1]  ;;  %v225_v35 = vld [vmem:[#allocation2] sm:$0x1]  ;;  %p633_p8 = scmp.ne.s32.totalorder %s923_s29, %s632_s12  ;;  %s636_s6 = sshll.u32 %s723_s4, 4  ;;  %s637_s6 = int_to_ptr.vmem [resolvable:$false] %s636_s6 }
  0x5f   : > { %v242_v21 = vadd.f32 %v241_v17, %v240_v13  ;;  %v231_v22 = vrot.slane %v230_v18, 2  ;;  %v262_v23 = vadd.f32 %v261_v19, %v260_v16  ;;  %v247_v31 = vld [vmem:[#allocation4] sm:$0x1]  ;;  %v257_v41 = vld [vmem:[#allocation5] sm:$0x1]  ;;  %s638_s5 = scalar_lea.vmem %s637_s6, 256  ;;  %p639_p10 = scmp.lt.s32.totalorder %s923_s29, %s637_s6 }
  0x60   : > { %v252_v24 = vadd.f32 %v251_v20, %v250_v15  ;;  %v269_v57 = vld [vmem:[#allocation6] sm:$0x1]  ;;  %p634_p7 = pnand %p633_p8, %p985_p0  ;;  %p640_p12 = scmp.lt.s32.totalorder %s638_s5, %s632_s12 }
  0x61   : > { %v243_v25 = vrot.slane %v242_v21, 1  ;;  %v232_v26 = vadd.f32 %v231_v22, %v230_v18  ;;  %v263_v27 = vrot.slane %v262_v23, 2 }
  0x62   : > { %v253_v29 = vrot.slane %v252_v24, 1  ;;  %p635_p4 = pneg %p634_p7  ;;  %p641_p1 = por %p640_p12, %p639_p10 }
  0x63   : > { %v244_v30 = vadd.f32 %v243_v25, %v242_v21  ;;  %v233_v32 = vrot.slane %v232_v26, 1  ;;  %v264_v33 = vadd.f32 %v263_v27, %v262_v23 }
  0x64   : > { %v254_v34 = vadd.f32 %v253_v29, %v252_v24  ;;  %p642_p2 = pnand %p641_p1, %p635_p4 }
  0x65   : > { %v245_v36 = vadd.f32 %v244_v30, %v237_v28  ;;  %v234_v37 = vadd.f32 %v233_v32, %v232_v26  ;;  %v265_v38 = vrot.slane %v264_v33, 1 }
  0x66   : > { %v571_v39 = vpop.eup %570  ;;  %v255_v40 = vadd.f32 %v254_v34, %v247_v31 }
  0x67   : > { %246 = vst [vmem:[#allocation3] sm:$0x1] %v245_v36  ;;  %v235_v42 = vadd.f32 %v234_v37, %v225_v35  ;;  %v266_v43 = vadd.f32 %v265_v38, %v264_v33  ;;  %v273_v44 = vsel %vm227_vm0, %v571_v39, 0.0  ;;  %v341_v35 = vlaneseq }
  0x68   : > { %256 = vst [vmem:[#allocation4] sm:$0x1] %v255_v40  ;;  %v274_v45 = vrot.slane %v273_v44, 4 }
  0x69   : > { %236 = vst [vmem:[#allocation2] sm:$0x1] %v235_v42  ;;  %v267_v46 = vadd.f32 %v266_v43, %v257_v41  ;;  %v342_v36 = vand.u32 127, %v341_v35 }
  0x6a   : > { %v275_v47 = vadd.f32 %v274_v45, %v273_v44 }
  0x6b   : > { %268 = vst [vmem:[#allocation5] sm:$0x1] %v267_v46  ;;  %vm343_vm2 = vcmp.eq.s32.totalorder %v342_v36, 0  ;;  %vm346_vm3 = vcmp.eq.s32.totalorder %v342_v36, 1  ;;  %vm349_vm4 = vcmp.eq.s32.totalorder %v342_v36, 2  ;;  %vm352_vm5 = vcmp.eq.s32.totalorder %v342_v36, 3 }
  0x6c   : > { %v276_v48 = vrot.slane %v275_v47, 2  ;;  %vm355_vm6 = vcmp.eq.s32.totalorder %v342_v36, 4 }
  0x6e   : > { %v297_v49 = vld [vmem:[#allocation3] sm:$0x1]  ;;  %v277_v50 = vadd.f32 %v276_v48, %v275_v47 }
  0x6f   : > { %v298_v51 = vsel %vm286_vm1, %v297_v49, 0.0  ;;  %v308_v52 = vld [vmem:[#allocation4] sm:$0x1] }
  0x70   : > { %299 = vadd.xlane.f32.xlu0 %v298_v51  ;;  %v309_v53 = vsel %vm286_vm1, %v308_v52, 0.0  ;;  %v285_v54 = vld [vmem:[#allocation2] sm:$0x1]  ;;  %v278_v55 = vrot.slane %v277_v50, 1 }
  0x71   : > { %310 = vadd.xlane.f32.xlu1 %v309_v53  ;;  %v287_v56 = vsel %vm286_vm1, %v285_v54, 0.0 }
  0x72   : > { %v319_v58 = vld [vmem:[#allocation5] sm:$0x1]  ;;  %v279_v59 = vadd.f32 %v278_v55, %v277_v50 }
  0x73   : > { %v320_v60 = vsel %vm286_vm1, %v319_v58, 0.0 }
  0x74   : > { %288 = vadd.xlane.f32.xlu0 %v287_v56  ;;  %v280_v61 = vadd.f32 %v279_v59, %v269_v57 }
  0x75   : > { %321 = vadd.xlane.f32.xlu1 %v320_v60 }
  0x76   : > { %281 = vst [vmem:[#allocation6] sm:$0x1] %v280_v61 }
  0x7d   : > { %v330_v62 = vld [vmem:[#allocation6] sm:$0x1] }
  0x7e   : > { %v331_v63 = vsel %vm286_vm1, %v330_v62, 0.0 }
  0x7f   : > { %332 = vadd.xlane.f32.xlu0 %v331_v63 }
  0xfd   : > { %v300_v0 = vpop.xlane.xlu0 %299 }
  0xfe   : > { %v301_v1 = vrot.slane %v300_v0, 4  ;;  %v311_v2 = vpop.xlane.xlu1 %310 }
  0xff   : > { %v312_v3 = vrot.slane %v311_v2, 4 }
 0x100   : > { %v302_v4 = vadd.f32 %v301_v1, %v300_v0 }
 0x101   : > { %v313_v5 = vadd.f32 %v312_v3, %v311_v2  ;;  %v289_v6 = vpop.xlane.xlu0 %288 }
 0x102   : > { %v303_v7 = vrot.slane %v302_v4, 2  ;;  %v290_v8 = vrot.slane %v289_v6, 4  ;;  %v322_v9 = vpop.xlane.xlu1 %321 }
 0x103   : > { %v314_v10 = vrot.slane %v313_v5, 2  ;;  %v323_v11 = vrot.slane %v322_v9, 4 }
 0x104   : > { %v291_v12 = vadd.f32 %v290_v8, %v289_v6  ;;  %v304_v14 = vadd.f32 %v303_v7, %v302_v4 }
 0x105   : > { %v324_v13 = vadd.f32 %v323_v11, %v322_v9  ;;  %v315_v15 = vadd.f32 %v314_v10, %v313_v5 }
 0x106   : > { %v292_v16 = vrot.slane %v291_v12, 2  ;;  %v305_v21 = vrot.slane %v304_v14, 1 }
 0x107   : > { %v325_v17 = vrot.slane %v324_v13, 2  ;;  %v316_v19 = vrot.slane %v315_v15, 1 }
 0x108   : > { %v293_v18 = vadd.f32 %v292_v16, %v291_v12  ;;  %v306_v28 = vadd.f32 %v305_v21, %v304_v14 }
 0x109   : > { %v326_v20 = vadd.f32 %v325_v17, %v324_v13  ;;  %v317_v26 = vadd.f32 %v316_v19, %v315_v15 }
 0x10a   : > { %v294_v22 = vrot.slane %v293_v18, 1 }
 0x10b   : > { %v327_v23 = vrot.slane %v326_v20, 1 }
 0x10c   : > { %v333_v24 = vpop.xlane.xlu0 %332  ;;  %v295_v25 = vadd.f32 %v294_v22, %v293_v18 }
 0x10d   : > { %v334_v27 = vrot.slane %v333_v24, 4  ;;  %v328_v29 = vadd.f32 %v327_v23, %v326_v20 }
 0x10e   : > { %492 = vpush %v295_v25 }
 0x10f   : > { %v335_v30 = vadd.f32 %v334_v27, %v333_v24  ;;  %494 = vpush %v306_v28 }
 0x110   : > { %496 = vpush %v317_v26 }
 0x111   : > { %v336_v31 = vrot.slane %v335_v30, 2  ;;  %498 = vpush %v328_v29 }
 0x113   : > { %v337_v32 = vadd.f32 %v336_v31, %v335_v30 }
 0x115   : > { %v338_v33 = vrot.slane %v337_v32, 1 }
 0x117   : > { %v339_v34 = vadd.f32 %v338_v33, %v337_v32 }
 0x119   : > { %500 = vpush %v339_v34 }
 0x13f   : > { %s493_s21 = spop %492 }
 0x140   : > { %v344_v37 = vstv %s493_s21  ;;  %s495_s7 = spop %494 }
 0x141   : > { %v345_v38 = vsel %vm343_vm2, %v344_v37, 0.0  ;;  %v347_v39 = vstv %s495_s7  ;;  %s497_s30 = spop %496 }
 0x142   : > { %v348_v40 = vsel %vm346_vm3, %v347_v39, %v345_v38  ;;  %s499_s20 = spop %498  ;;  %v350_v41 = vstv %s497_s30 }
 0x143   : > { %v351_v42 = vsel %vm349_vm4, %v350_v41, %v348_v40  ;;  %v353_v43 = vstv %s499_s20 }
 0x144   : > { %v354_v44 = vsel %vm352_vm5, %v353_v43, %v351_v42 }
 0x14a   : > { %s501_s25 = spop %500 }
 0x14b   : > { %v356_v45 = vstv %s501_s25 }
 0x14c   : > { %v357_v46 = vsel %vm355_vm6, %v356_v45, %v354_v44 }
 0x14d   : > { %358 = vst [vmem:[%s213_s28] sm:$0xff] %v357_v46 }
 0x14e   : > { %645 = shalt.err (!%p642_p2)
}
 0x14f   : > { %s646_s15 = scalar_lea.hbm %s921_s8, 128  ;;  %s650_s7 = scalar_lea.hbm %s972_s2, 256 }
 0x150   : > { %p647_p9 = scmp.ne.s32.totalorder %s921_s8, %s646_s15  ;;  %p651_p6 = scmp.lt.u32.totalorder %s921_s8, %s972_s2 }
 0x151   : > { %p652_p13 = scmp.lt.u32.totalorder %s650_s7, %s646_s15  ;;  %p654_p8 = scmp.lt.u32.totalorder %s646_s15, %s921_s8 }
 0x152   : > { %p648_p11 = pnand %p647_p9, %p985_p0 }
 0x153   : > { %p653_p5 = por %p652_p13, %p651_p6 }
 0x154   : > { %p649_p3 = pneg %p648_p11 }
 0x155   : > { %p655_p7 = por %p654_p8, %p653_p5 }
 0x157   : > { %p656_p4 = pnand %p655_p7, %p649_p3 }
 0x159   : > { %659 = shalt.err (!%p656_p4)
}
 0x15a   : > { %506 = dma.vmem_to_hbm [thread:$0]  (%p985_p0), %s923_s29, 128, %s921_s8, %s360_s18  }
 0x15b PF: > { %s385_s20 = sand.u32 1, %s698_s9   ;;  %p986_p10 = scmp.ne.s32.totalorder %s978_s24, 0 }
 0x15c   : > { %p987_p12 = scmp.ge.s32.totalorder %s718_s14, 2  ;;  %s386_s27 = scalar_lea.sflag [#allocation9], %s385_s20 }
 0x15e   : > { %p516_p1 = pnand %p987_p12, %p986_p10 }
 0x160   : > { %693 = dma.done.wait (!%p516_p1), %s386_s27, 128  }
 0x161   : > { %695 = vsyncadd (!%p516_p1), %s386_s27, 4294967168  ;;  %s21_s14 = sadd.s32 1, %s718_s14   ;;  %s988_s9 = smov %s702_s10 }
 0x162   : > { %p18_p2 = scmp.ge.s32.totalorder %s21_s14, 4   ;;  %s989_s10 = smov %s706_s11 }
 0x163   : > { %s990_s11 = smov %s795_s23  ;;  %s991_s12 = smov %s714_s13 }
 0x164   : > { %s992_s13 = smov %s994_s17  ;;  %20 = sbr.rel (!%p18_p2) target bundleno = 8 (0x8), region = 94 }
 0x16b   :  { %391 = vsyncpa [#allocation8], 1 }
 0x16c   :  { %393 = vsyncpa [#allocation8 + $0x1], 1 }
 0x16d   :  { %394 = vsyncpa [#allocation11], 1 }
 0x16e   :  { %396 = vsyncpa [#allocation11 + $0x1], 1 }
 0x16f   :  { %397 = vsyncpa [#allocation9], 1 }
 0x170   :  { %399 = vsyncpa [#allocation9 + $0x1], 1 }

</bundles_post_ra>
